<compile_context>
chip_gen: v5e
topology: v5e:2x2
jax: 0.10.0
libtpu: 0.0.40
codegen_flags: <defaults>
</compile_context>

<pallas_src>
import functools
import math

import jax
import jax.numpy as jnp
from jax import lax
from jax.experimental import pallas as pl
from jax.experimental.pallas import tpu as pltpu

_LANE = 128
_SUBLANE = 8


def _round_up(n, m):
    return ((n + m - 1) // m) * m


def _gelu(x, approximate=False):
    if approximate:
        # tanh approximation: tanh goes to the EUP (its own VLIW slot, ~free vs. VPU erf poly).
        c = math.sqrt(2.0 / math.pi)
        return 0.5 * x * (1.0 + jnp.tanh(c * (x + 0.044715 * (x * x * x))))
    # Exact erf form, matches torch F.gelu default (approximate='none').
    return 0.5 * x * (1.0 + lax.erf(x * (1.0 / math.sqrt(2.0))))


def _aux_kernel(x_ref, w1_ref, b1_ref, w2_ref, b2_ref, o_ref, *, approximate_gelu):
    # x_ref: (TB, 6) streamed per tile; w1_ref: (6, Dp), b1_ref: (1, Dp),
    # w2_ref: (Dp, Dp), b2_ref: (1, Dp) resident; o_ref: (TB, Dp) lane-dense.
    x = x_ref[...].astype(jnp.float32)                       # (TB, 6)
    k_in = x.shape[1]

    # ---- Layer 1 on the VPU -------------------------------------------------
    # K == 6 is tiny vs the MXU's native contraction width, so instead of a padded
    # systolic pass we do K broadcast FMAs.  This also leaves the vector-extended
    # (MXU) issue slot entirely to layer 2.
    h = x[:, 0:1] * w1_ref[0:1, :].astype(jnp.float32) + b1_ref[...].astype(jnp.float32)
    for k in range(1, k_in):                                  # static unroll, K == 6
        h = h + x[:, k:k + 1] * w1_ref[k:k + 1, :].astype(jnp.float32)

    # GELU in f32 (keep elementwise path f32 for v5e compatibility).
    h = _gelu(h, approximate=approximate_gelu)

    # ---- Layer 2 on the MXU (lane-dense Dp x Dp) ------------------------------
    # Operands take w2's storage dtype (bf16 on v6e/v7x for ~2x MXU rate and half
    # the resident-weight HBM/VMEM footprint); accumulation stays f32.
    out = jnp.dot(h.astype(w2_ref.dtype), w2_ref[...],
                  preferred_element_type=jnp.float32)
    out = out + b2_ref[...].astype(jnp.float32)
    o_ref[...] = out.astype(o_ref.dtype)


def aux_forward(x, w1, b1, w2, b2, *, tile_b=512, approximate_gelu=False):
    """x: (B, 6); w1: (6, D); b1: (D,); w2: (D, D) (f32 or bf16); b2: (D,)."""
    B, K = x.shape
    D = w1.shape[1]
    Dp = _round_up(D, _LANE)              # lane-dense width -> unmasked vst stores

    # Batch tile: as big as useful, never larger than the (sublane-rounded) batch.
    tile_b = max(_SUBLANE, min(tile_b, _round_up(B, _SUBLANE)))
    tile_b = _round_up(tile_b, _SUBLANE)
    Bp = _round_up(B, tile_b)

    # Zero-pad so the extra columns stay exactly zero end-to-end (gelu(0) == 0),
    # making the padded output columns pure zeros that we slice off at the end.
    x_p = jnp.pad(x, ((0, Bp - B), (0, 0)))
    w1_p = jnp.pad(w1, ((0, 0), (0, Dp - D)))
    b1_p = jnp.pad(b1, ((0, Dp - D),)).reshape(1, Dp)
    w2_p = jnp.pad(w2, ((0, Dp - D), (0, Dp - D)))
    b2_p = jnp.pad(b2, ((0, Dp - D),)).reshape(1, Dp)

    kernel = functools.partial(_aux_kernel, approximate_gelu=approximate_gelu)

    out_p = pl.pallas_call(
        kernel,
        out_shape=jax.ShapeDtypeStruct((Bp, Dp), x.dtype),
        grid=(Bp // tile_b,),
        in_specs=[
            # Streamed per batch tile (auto double-buffered by the Pallas pipeline).
            pl.BlockSpec((tile_b, K), lambda i: (i, 0)),
            # Resident weights/biases: same block index every step -> fetched once.
            pl.BlockSpec((K, Dp), lambda i: (0, 0)),
            pl.BlockSpec((1, Dp), lambda i: (0, 0)),
            pl.BlockSpec((Dp, Dp), lambda i: (0, 0)),
            pl.BlockSpec((1, Dp), lambda i: (0, 0)),
        ],
        out_specs=pl.BlockSpec((tile_b, Dp), lambda i: (i, 0)),
        compiler_params=pltpu.CompilerParams(
            # Batch tiles are independent -> shard across both TCs on v7x (no-op on v5e/v6e).
            dimension_semantics=("parallel",),
        ),
    )(x_p, w1_p, b1_p, w2_p, b2_p)

    return out_p[:B, :D]


def init_params(key, aux_dim, in_dim=6, dtype=jnp.float32):
    """Deterministic init mimicking nn.Linear (weights stored transposed: (in, out))."""
    k1, k2, k3, k4 = jax.random.split(key, 4)
    bound1 = 1.0 / math.sqrt(in_dim)
    w1 = jax.random.uniform(k1, (in_dim, aux_dim), dtype, -bound1, bound1)
    b1 = jax.random.uniform(k2, (aux_dim,), dtype, -bound1, bound1)
    bound2 = 1.0 / math.sqrt(aux_dim)
    w2 = jax.random.uniform(k3, (aux_dim, aux_dim), dtype, -bound2, bound2)
    b2 = jax.random.uniform(k4, (aux_dim,), dtype, -bound2, bound2)
    return w1, b1, w2, b2


def aux_reference(x, w1, b1, w2, b2):
    h = jax.nn.gelu(jnp.dot(x, w1, precision=lax.Precision.HIGHEST) + b1,
                    approximate=False)
    return jnp.dot(h, w2, precision=lax.Precision.HIGHEST) + b2


if __name__ == "__main__":
    key = jax.random.PRNGKey(0)
    kx, kp = jax.random.split(key)

    AUX_DIM = 32
    w1, b1, w2, b2 = init_params(kp, AUX_DIM)

    # Case 1: small ragged batch -> exercises batch padding, single grid step.
    x_small = jax.random.normal(kx, (10, 6), dtype=jnp.float32)
    out_small = jax.block_until_ready(aux_forward(x_small, w1, b1, w2, b2))
    ref_small = aux_reference(x_small, w1, b1, w2, b2)
    assert out_small.shape == (10, AUX_DIM)
    assert jnp.allclose(out_small, ref_small, atol=1e-5, rtol=1e-5)

    # Case 2: larger batch with a small explicit tile -> multi-step pipelined grid.
    x_big = jax.random.normal(kx, (256, 6), dtype=jnp.float32)
    out_big = jax.block_until_ready(aux_forward(x_big, w1, b1, w2, b2, tile_b=128))
    ref_big = aux_reference(x_big, w1, b1, w2, b2)
    assert out_big.shape == (256, AUX_DIM)
    assert jnp.allclose(out_big, ref_big, atol=1e-5, rtol=1e-5)

    # Case 3: bf16 layer-2 weights (v6e/v7x fast MXU path), f32 accumulation.
    out_bf16 = jax.block_until_ready(
        aux_forward(x_big, w1, b1, w2.astype(jnp.bfloat16), b2, tile_b=128))
    assert jnp.allclose(out_bf16, ref_big, atol=3e-2, rtol=3e-2)

    print("KERNEL_OK")
</pallas_src>

<mosaic_0001>
module attributes {stable_mosaic.version = 11 : i64} {
  func.func @_aux_kernel(%arg0: i32, %arg1: memref<16x6xf32, #tpu.memory_space<vmem>>, %arg2: memref<6x128xf32, #tpu.memory_space<vmem>>, %arg3: memref<1x128xf32, #tpu.memory_space<vmem>>, %arg4: memref<128x128xf32, #tpu.memory_space<vmem>>, %arg5: memref<1x128xf32, #tpu.memory_space<vmem>>, %arg6: memref<16x128xf32, #tpu.memory_space<vmem>>) attributes {dimension_semantics = [#tpu.dimension_semantics<parallel>], iteration_bounds = array<i64: 1>, scalar_prefetch = 0 : i64, scratch_operands = 0 : i64, tpu.core_type = #tpu.core_type<tc>, window_params = [{transform_indices = @transform_0, window_bounds = array<i64: 16, 6>}, {pipeline_mode = #tpu.pipeline_mode<synchronous>, transform_indices = @transform_1, window_bounds = array<i64: 6, 128>}, {pipeline_mode = #tpu.pipeline_mode<synchronous>, transform_indices = @transform_2, window_bounds = array<i64: 1, 128>}, {pipeline_mode = #tpu.pipeline_mode<synchronous>, transform_indices = @transform_3, window_bounds = array<i64: 128, 128>}, {pipeline_mode = #tpu.pipeline_mode<synchronous>, transform_indices = @transform_4, window_bounds = array<i64: 1, 128>}, {transform_indices = @transform_5, window_bounds = array<i64: 16, 128>}]} {
    %c0 = arith.constant 0 : index
    %c0_0 = arith.constant 0 : index
    %0 = vector.load %arg1[%c0, %c0_0] : memref<16x6xf32, #tpu.memory_space<vmem>>, vector<16x6xf32>
    %1 = vector.extract_strided_slice %0 {offsets = [0, 0], sizes = [16, 1], strides = [1, 1]} : vector<16x6xf32> to vector<16x1xf32>
    %c0_1 = arith.constant 0 : index
    %c0_2 = arith.constant 0 : index
    %2 = vector.load %arg2[%c0_1, %c0_2] : memref<6x128xf32, #tpu.memory_space<vmem>>, vector<1x128xf32>
    %3 = vector.broadcast %1 : vector<16x1xf32> to vector<16x128xf32>
    %4 = vector.broadcast %2 : vector<1x128xf32> to vector<16x128xf32>
    %5 = arith.mulf %3, %4 : vector<16x128xf32>
    %c0_3 = arith.constant 0 : index
    %c0_4 = arith.constant 0 : index
    %6 = vector.load %arg3[%c0_3, %c0_4] : memref<1x128xf32, #tpu.memory_space<vmem>>, vector<1x128xf32>
    %7 = vector.broadcast %6 : vector<1x128xf32> to vector<16x128xf32>
    %8 = arith.addf %5, %7 : vector<16x128xf32>
    %9 = vector.extract_strided_slice %0 {offsets = [0, 1], sizes = [16, 1], strides = [1, 1]} : vector<16x6xf32> to vector<16x1xf32>
    %c1 = arith.constant 1 : index
    %c0_5 = arith.constant 0 : index
    %10 = vector.load %arg2[%c1, %c0_5] : memref<6x128xf32, #tpu.memory_space<vmem>>, vector<1x128xf32>
    %11 = vector.broadcast %9 : vector<16x1xf32> to vector<16x128xf32>
    %12 = vector.broadcast %10 : vector<1x128xf32> to vector<16x128xf32>
    %13 = arith.mulf %11, %12 : vector<16x128xf32>
    %14 = arith.addf %8, %13 : vector<16x128xf32>
    %15 = vector.extract_strided_slice %0 {offsets = [0, 2], sizes = [16, 1], strides = [1, 1]} : vector<16x6xf32> to vector<16x1xf32>
    %c2 = arith.constant 2 : index
    %c0_6 = arith.constant 0 : index
    %16 = vector.load %arg2[%c2, %c0_6] : memref<6x128xf32, #tpu.memory_space<vmem>>, vector<1x128xf32>
    %17 = vector.broadcast %15 : vector<16x1xf32> to vector<16x128xf32>
    %18 = vector.broadcast %16 : vector<1x128xf32> to vector<16x128xf32>
    %19 = arith.mulf %17, %18 : vector<16x128xf32>
    %20 = arith.addf %14, %19 : vector<16x128xf32>
    %21 = vector.extract_strided_slice %0 {offsets = [0, 3], sizes = [16, 1], strides = [1, 1]} : vector<16x6xf32> to vector<16x1xf32>
    %c3 = arith.constant 3 : index
    %c0_7 = arith.constant 0 : index
    %22 = vector.load %arg2[%c3, %c0_7] : memref<6x128xf32, #tpu.memory_space<vmem>>, vector<1x128xf32>
    %23 = vector.broadcast %21 : vector<16x1xf32> to vector<16x128xf32>
    %24 = vector.broadcast %22 : vector<1x128xf32> to vector<16x128xf32>
    %25 = arith.mulf %23, %24 : vector<16x128xf32>
    %26 = arith.addf %20, %25 : vector<16x128xf32>
    %27 = vector.extract_strided_slice %0 {offsets = [0, 4], sizes = [16, 1], strides = [1, 1]} : vector<16x6xf32> to vector<16x1xf32>
    %c4 = arith.constant 4 : index
    %c0_8 = arith.constant 0 : index
    %28 = vector.load %arg2[%c4, %c0_8] : memref<6x128xf32, #tpu.memory_space<vmem>>, vector<1x128xf32>
    %29 = vector.broadcast %27 : vector<16x1xf32> to vector<16x128xf32>
    %30 = vector.broadcast %28 : vector<1x128xf32> to vector<16x128xf32>
    %31 = arith.mulf %29, %30 : vector<16x128xf32>
    %32 = arith.addf %26, %31 : vector<16x128xf32>
    %33 = vector.extract_strided_slice %0 {offsets = [0, 5], sizes = [16, 1], strides = [1, 1]} : vector<16x6xf32> to vector<16x1xf32>
    %c5 = arith.constant 5 : index
    %c0_9 = arith.constant 0 : index
    %34 = vector.load %arg2[%c5, %c0_9] : memref<6x128xf32, #tpu.memory_space<vmem>>, vector<1x128xf32>
    %35 = vector.broadcast %33 : vector<16x1xf32> to vector<16x128xf32>
    %36 = vector.broadcast %34 : vector<1x128xf32> to vector<16x128xf32>
    %37 = arith.mulf %35, %36 : vector<16x128xf32>
    %38 = arith.addf %32, %37 : vector<16x128xf32>
    %cst = arith.constant 5.000000e-01 : f32
    %39 = vector.broadcast %cst : f32 to vector<16x128xf32>
    %40 = arith.mulf %39, %38 : vector<16x128xf32>
    %cst_10 = arith.constant 0.707106769 : f32
    %41 = vector.broadcast %cst_10 : f32 to vector<16x128xf32>
    %42 = arith.mulf %38, %41 : vector<16x128xf32>
    %43 = math.erf %42 : vector<16x128xf32>
    %cst_11 = arith.constant 1.000000e+00 : f32
    %44 = vector.broadcast %cst_11 : f32 to vector<16x128xf32>
    %45 = arith.addf %44, %43 : vector<16x128xf32>
    %46 = arith.mulf %40, %45 : vector<16x128xf32>
    %c0_12 = arith.constant 0 : index
    %c0_13 = arith.constant 0 : index
    %47 = vector.load %arg4[%c0_12, %c0_13] : memref<128x128xf32, #tpu.memory_space<vmem>>, vector<128x128xf32>
    %cst_14 = arith.constant dense<0.000000e+00> : vector<16x128xf32>
    %48 = tpu.matmul %46, %47, %cst_14 {dimension_numbers = #tpu.dot_dimension_numbers<[1], [0], [0], [1], [0, 0, 1, 1], [], []>} : vector<16x128xf32>, vector<128x128xf32>, vector<16x128xf32> -> vector<16x128xf32>
    %c0_15 = arith.constant 0 : index
    %c0_16 = arith.constant 0 : index
    %49 = vector.load %arg5[%c0_15, %c0_16] : memref<1x128xf32, #tpu.memory_space<vmem>>, vector<1x128xf32>
    %50 = vector.broadcast %49 : vector<1x128xf32> to vector<16x128xf32>
    %51 = arith.addf %48, %50 : vector<16x128xf32>
    %c0_17 = arith.constant 0 : index
    %c0_18 = arith.constant 0 : index
    %52 = vector.load %arg6[%c0_17, %c0_18] : memref<16x128xf32, #tpu.memory_space<vmem>>, vector<16x128xf32>
    tpu.vector_store %arg6[%c0_17, %c0_18], %51 {strides = array<i32>} : memref<16x128xf32, #tpu.memory_space<vmem>>, vector<16x128xf32>,
    return
  }
  func.func @transform_0(%arg0: i32) -> (i32, i32) {
    %c0_i32 = arith.constant 0 : i32
    %c0_i32_0 = arith.constant 0 : i32
    return %arg0, %c0_i32 : i32, i32
  }
  func.func @transform_1(%arg0: i32) -> (i32, i32) {
    %c0_i32 = arith.constant 0 : i32
    %c0_i32_0 = arith.constant 0 : i32
    %c0_i32_1 = arith.constant 0 : i32
    return %c0_i32, %c0_i32_0 : i32, i32
  }
  func.func @transform_2(%arg0: i32) -> (i32, i32) {
    %c0_i32 = arith.constant 0 : i32
    %c0_i32_0 = arith.constant 0 : i32
    %c0_i32_1 = arith.constant 0 : i32
    return %c0_i32, %c0_i32_0 : i32, i32
  }
  func.func @transform_3(%arg0: i32) -> (i32, i32) {
    %c0_i32 = arith.constant 0 : i32
    %c0_i32_0 = arith.constant 0 : i32
    %c0_i32_1 = arith.constant 0 : i32
    return %c0_i32, %c0_i32_0 : i32, i32
  }
  func.func @transform_4(%arg0: i32) -> (i32, i32) {
    %c0_i32 = arith.constant 0 : i32
    %c0_i32_0 = arith.constant 0 : i32
    %c0_i32_1 = arith.constant 0 : i32
    return %c0_i32, %c0_i32_0 : i32, i32
  }
  func.func @transform_5(%arg0: i32) -> (i32, i32) {
    %c0_i32 = arith.constant 0 : i32
    %c0_i32_0 = arith.constant 0 : i32
    return %arg0, %c0_i32 : i32, i32
  }
}

</mosaic_0001>

<bundles_post_ra>
// kernel: tpu_custom_call.1
= control target key start
LH: loop header
LB: loop body
LE: loop exit
PB: predicated region body
PF: predicated region fallthrough
CT: control target
= control target key end

     0   :  { %10 = vsyncpa [#allocation3], 0  ;;  %s482_s0 = inlined_call_operand.vmem [shape: f32[16,6], index: 0, kind: input, shape index: {}]   ;;  %s483_s1 = inlined_call_operand.vmem [shape: f32[6,128], index: 1, kind: input, shape index: {}]   ;;  %s484_s2 = inlined_call_operand.vmem [shape: f32[1,128], index: 2, kind: input, shape index: {}]   ;;  %s485_s3 = inlined_call_operand.hbm [shape: f32[128,128], index: 3, kind: input, shape index: {}]   ;;  %s486_s4 = inlined_call_operand.vmem [shape: f32[1,128], index: 4, kind: input, shape index: {}]   ;;  %s487_s5 = inlined_call_operand.hbm [shape: f32[16,128], index: 5, kind: output, shape index: {}]  }
   0x1   :  { %11 = vsyncpa [#allocation4], 0  ;;  %s22_s20 = sshll.u32 %s485_s3, 4  ;;  %s382_s21 = smov [#allocation2]   ;;  %s23_s20 = int_to_ptr.hbm [resolvable:$true] %s22_s20 }
   0x2   :  { %s24_s22 = sshll.u32 %s382_s21, 4  ;;  %s383_s23 = smov 128   ;;  %s25_s22 = int_to_ptr.vmem [resolvable:$true] %s24_s22 }
   0x3   :  { %s384_s24 = smov 8  }
   0x4   :  { %30 = dma.hbm_to_vmem [thread:$0]  %s23_s20, 2048, %s25_s22, [#allocation3], %s383_s23, %s383_s23, %s384_s24  }
   0x5   :  { %378 = dma.done.wait [#allocation3], 2048  }
   0x6   :  { %379 = vsyncadd [#allocation3], 4294965248  ;;  %v385_v0 = vmov 1   ;;  %v386_v1 = vmov 0   ;;  %v387_v2 = vmov 2   ;;  %v37_v3 = vld [vmem:[%s482_s0] sm:$0xff] }
   0x7   :  { %310 = vset.pattern.permute.xlu1 %v385_v0  ;;  %309 = vset.pattern.permute.xlu0 %v386_v1  ;;  %v38_v4 = vld [vmem:[%s482_s0 + $0x8] sm:$0xff]  ;;  %v388_v5 = vmov 3   ;;  %v389_v6 = vmov 4   ;;  %v390_v7 = vmov 5   ;;  %v320_v12 = vld [vmem:[%s483_s1] ss:$0 sm:$0xff] }
   0x8   :  { %311 = vset.pattern.permute.xlu2 %v387_v2  ;;  %61 = vperm.xlu1 %310, %v37_v3   ;;  %v232_v13 = vld [vmem:[#allocation2 + $0x78] sm:$0xff]  ;;  %v231_v14 = vld [vmem:[#allocation2 + $0x70] sm:$0xff]  ;;  %v321_v15 = vld [vmem:[%s484_s2] ss:$0 sm:$0xff]  ;;  %s391_s16 = smov [#allocation5]   ;;  %s268_s20 = sshll.u32 %s487_s5, 4  ;;  %s269_s20 = int_to_ptr.hbm [resolvable:$true] %s268_s20 }
   0x9   :  { %42 = vperm.xlu0 %309, %v37_v3   ;;  %75 = vperm.xlu2 %311, %v37_v3   ;;  %v230_v18 = vld [vmem:[#allocation2 + $0x68] sm:$0xff]  ;;  %v319_v19 = vld [vmem:[%s483_s1 + $0x1] ss:$0 sm:$0xff]  ;;  %v228_v24 = vld [vmem:[#allocation2 + $0x58] sm:$0xff]  ;;  %s266_s17 = sshll.u32 %s391_s16, 4  ;;  %s267_s17 = int_to_ptr.vmem [resolvable:$true] %s266_s17 }
   0xa   :  { %237 = vmatpush.msra.mxu0 %v232_v13  ;;  %283 = vmatpush.msra.mxu1 %v232_v13  ;;  %v229_v22 = vld [vmem:[#allocation2 + $0x60] sm:$0xff]  ;;  %v227_v28 = vld [vmem:[#allocation2 + $0x50] sm:$0xff]  ;;  %v226_v32 = vld [vmem:[#allocation2 + $0x48] sm:$0xff] }
   0xb   :  { %v318_v25 = vld [vmem:[%s483_s1 + $0x2] ss:$0 sm:$0xff]  ;;  %v322_v30 = vld [vmem:[%s483_s1 + $0x4] ss:$0 sm:$0xff]  ;;  %v323_v31 = vld [vmem:[%s483_s1 + $0x3] ss:$0 sm:$0xff] }
   0xc   :  { %238 = vmatpush.msra.mxu0 %v231_v14  ;;  %284 = vmatpush.msra.mxu1 %v231_v14  ;;  %v324_v34 = vld [vmem:[%s483_s1 + $0x5] ss:$0 sm:$0xff]  ;;  %v224_v44 = vld [vmem:[#allocation2 + $0x38] sm:$0xff]  ;;  %v223_v48 = vld [vmem:[#allocation2 + $0x30] sm:$0xff] }
   0xd   :  { %v225_v39 = vld [vmem:[#allocation2 + $0x40] sm:$0xff]  ;;  %v222_v52 = vld [vmem:[#allocation2 + $0x28] sm:$0xff]  ;;  %v220_v62 = vld [vmem:[#allocation2 + $0x18] sm:$0xff] }
   0xe   :  { %239 = vmatpush.msra.mxu0 %v230_v18  ;;  %285 = vmatpush.msra.mxu1 %v230_v18  ;;  %v221_v55 = vld [vmem:[#allocation2 + $0x20] sm:$0xff]  ;;  %v219_v1 = vld [vmem:[#allocation2 + $0x10] sm:$0xff] }
  0x10   :  { %65 = vperm.xlu1 %310, %v38_v4   ;;  %240 = vmatpush.msra.mxu0 %v229_v22 }
  0x11   :  { %47 = vperm.xlu0 %309, %v38_v4   ;;  %79 = vperm.xlu2 %311, %v38_v4  }
  0x12   :  { %286 = vmatpush.msra.mxu1 %v229_v22  ;;  %241 = vmatpush.msra.mxu0 %v228_v24 }
  0x14   :  { %287 = vmatpush.msra.mxu1 %v228_v24  ;;  %242 = vmatpush.msra.mxu0 %v227_v28 }
  0x16   :  { %288 = vmatpush.msra.mxu1 %v227_v28  ;;  %243 = vmatpush.msra.mxu0 %v226_v32 }
  0x18   :  { %313 = vset.pattern.permute.xlu1 %v388_v5  ;;  %289 = vmatpush.msra.mxu1 %v226_v32 }
  0x19   :  { %312 = vset.pattern.permute.xlu0 %v388_v5  ;;  %93 = vperm.xlu1 %313, %v38_v4  }
  0x1a   :  { %89 = vperm.xlu0 %312, %v37_v3   ;;  %314 = vset.pattern.permute.xlu2 %v389_v6 }
  0x1b   :  { %103 = vperm.xlu2 %314, %v37_v3   ;;  %244 = vmatpush.msra.mxu0 %v225_v39 }
  0x1c   :  { %290 = vmatpush.msra.mxu1 %v225_v39 }
  0x1d   :  { %245 = vmatpush.msra.mxu0 %v224_v44 }
  0x1e   :  { %291 = vmatpush.msra.mxu1 %v224_v44 }
  0x1f   :  { %246 = vmatpush.msra.mxu0 %v223_v48 }
  0x20   :  { %292 = vmatpush.msra.mxu1 %v223_v48 }
  0x21   :  { %315 = vset.pattern.permute.xlu1 %v389_v6  ;;  %247 = vmatpush.msra.mxu0 %v222_v52 }
  0x22   :  { %317 = vset.pattern.permute.xlu0 %v390_v7  ;;  %107 = vperm.xlu1 %315, %v38_v4  }
  0x23   :  { %121 = vperm.xlu0 %317, %v38_v4   ;;  %316 = vset.pattern.permute.xlu2 %v390_v7  ;;  %v218_v4 = vld [vmem:[#allocation2 + $0x8] sm:$0xff] }
  0x24   :  { %117 = vperm.xlu2 %316, %v37_v3   ;;  %293 = vmatpush.msra.mxu1 %v222_v52 }
  0x25   :  { %248 = vmatpush.msra.mxu0 %v221_v55 }
  0x26   :  { %294 = vmatpush.msra.mxu1 %v221_v55 }
  0x27   :  { %249 = vmatpush.msra.mxu0 %v220_v62 }
  0x28   :  { %295 = vmatpush.msra.mxu1 %v220_v62 }
  0x29   :  { %250 = vmatpush.msra.mxu0 %v219_v1 }
  0x2a   :  { %296 = vmatpush.msra.mxu1 %v219_v1 }
  0x2b   :  { %251 = vmatpush.msra.mxu0 %v218_v4 }
  0x2c   :  { %297 = vmatpush.msra.mxu1 %v218_v4 }
  0x63   :  { %v76_v8 = vpop.permute.xlu2 %75 }
  0x64   :  { %v83_v33 = vmul.f32 %v318_v25, %v76_v8  ;;  %v217_v8 = vld [vmem:[#allocation2] sm:$0xff] }
  0x65   :  { %252 = vmatpush.msra.mxu0 %v217_v8  ;;  %298 = vmatpush.msra.mxu1 %v217_v8 }
  0x6b   :  { %v80_v9 = vpop.permute.xlu2 %79 }
  0x6c   :  { %v84_v50 = vmul.f32 %v318_v25, %v80_v9 }
  0x75   :  { %v104_v17 = vpop.permute.xlu2 %103 }
  0x76   :  { %v111_v40 = vmul.f32 %v322_v30, %v104_v17 }
  0x7a   :  { %v62_v10 = vpop.permute.xlu1 %61 }
  0x7b   :  { %v43_v11 = vpop.permute.xlu0 %42  ;;  %v69_v26 = vmul.f32 %v319_v19, %v62_v10 }
  0x7c   :  { %v51_v16 = vmul.f32 %v320_v12, %v43_v11 }
  0x7e   :  { %v57_v23 = vadd.f32 %v321_v15, %v51_v16  ;;  %v118_v35 = vpop.permute.xlu2 %117 }
  0x7f   :  { %v125_v46 = vmul.f32 %v324_v34, %v118_v35 }
  0x80   :  { %v71_v29 = vadd.f32 %v69_v26, %v57_v23 }
  0x82   :  { %v66_v20 = vpop.permute.xlu1 %65  ;;  %v85_v41 = vadd.f32 %v83_v33, %v71_v29 }
  0x83   :  { %v48_v21 = vpop.permute.xlu0 %47  ;;  %v70_v43 = vmul.f32 %v319_v19, %v66_v20 }
  0x84   :  { %v52_v27 = vmul.f32 %v320_v12, %v48_v21 }
  0x86   :  { %v58_v36 = vadd.f32 %v321_v15, %v52_v27 }
  0x88   :  { %v72_v47 = vadd.f32 %v70_v43, %v58_v36 }
  0x8a   :  { %v86_v54 = vadd.f32 %v84_v50, %v72_v47 }
  0x8b   :  { %v94_v37 = vpop.permute.xlu1 %93 }
  0x8c   :  { %v90_v38 = vpop.permute.xlu0 %89  ;;  %v98_v51 = vmul.f32 %v323_v31, %v94_v37 }
  0x8d   :  { %v97_v42 = vmul.f32 %v323_v31, %v90_v38 }
  0x8e   :  { %v100_v59 = vadd.f32 %v98_v51, %v86_v54 }
  0x8f   :  { %v99_v45 = vadd.f32 %v97_v42, %v85_v41 }
  0x91   :  { %v113_v49 = vadd.f32 %v111_v40, %v99_v45 }
  0x93   :  { %v455_v53 = vadd.f32 %v125_v46, %v113_v49 }
  0x94   :  { %v108_v57 = vpop.permute.xlu1 %107 }
  0x95   :  { %v458_v56 = vmul.f32 0.70710677, %v455_v53  ;;  %v122_v58 = vpop.permute.xlu0 %121  ;;  %v112_v60 = vmul.f32 %v322_v30, %v108_v57 }
  0x96   :  { %v126_v61 = vmul.f32 %v324_v34, %v122_v58 }
  0x97   :  { %v133_v63 = vmul.f32 %v458_v56, %v458_v56  ;;  %v114_v0 = vadd.f32 %v112_v60, %v100_v59 }
  0x99   :  { %v134_v2 = vmin.f32 %v133_v63, 16.0  ;;  %v462_v3 = vadd.f32 %v126_v61, %v114_v0 }
  0x9b   :  { %v135_v5 = vmul.f32 2.1237322e-06, %v134_v2  ;;  %v146_v6 = vmul.f32 3.8918573e-05, %v134_v2  ;;  %v465_v7 = vmul.f32 0.70710677, %v462_v3 }
  0x9d   :  { %v136_v9 = vadd.f32 0.00028619796, %v135_v5  ;;  %v147_v10 = vadd.f32 0.001143296, %v146_v6  ;;  %v173_v11 = vmul.f32 %v465_v7, %v465_v7 }
  0x9f   :  { %v137_v12 = vmul.f32 %v136_v9, %v134_v2  ;;  %v148_v13 = vmul.f32 %v147_v10, %v134_v2  ;;  %v174_v14 = vmin.f32 %v173_v11, 16.0  ;;  %v129_v9 = vmul.f32 0.5, %v455_v53  ;;  %v325_v53 = vld [vmem:[%s486_s4] ss:$0 sm:$0xff] }
  0xa1   :  { %v149_v15 = vadd.f32 0.014752088, %v148_v13  ;;  %v138_v16 = vadd.f32 0.0036580483, %v137_v12  ;;  %v175_v17 = vmul.f32 2.1237322e-06, %v174_v14 }
  0xa2   :  { %v186_v18 = vmul.f32 3.8918573e-05, %v174_v14 }
  0xa3   :  { %v150_v19 = vmul.f32 %v149_v15, %v134_v2  ;;  %v176_v20 = vadd.f32 0.00028619796, %v175_v17  ;;  %v139_v23 = vmul.f32 %v138_v16, %v134_v2  ;;  %v130_v17 = vmul.f32 0.5, %v462_v3 }
  0xa4   :  { %v187_v21 = vadd.f32 0.001143296, %v186_v18 }
  0xa5   :  { %v151_v22 = vadd.f32 0.112945676, %v150_v19  ;;  %v177_v24 = vmul.f32 %v176_v20, %v174_v14  ;;  %v140_v30 = vadd.f32 0.05243302, %v139_v23 }
  0xa6   :  { %v188_v25 = vmul.f32 %v187_v21, %v174_v14 }
  0xa7   :  { %v152_v26 = vmul.f32 %v151_v22, %v134_v2  ;;  %v178_v29 = vadd.f32 0.0036580483, %v177_v24  ;;  %v141_v36 = vmul.f32 %v140_v30, %v134_v2 }
  0xa8   :  { %v189_v27 = vadd.f32 0.014752088, %v188_v25 }
  0xa9   :  { %v153_v28 = vadd.f32 0.4994258, %v152_v26  ;;  %v179_v35 = vmul.f32 %v178_v29, %v174_v14  ;;  %v142_v40 = vadd.f32 0.18741608, %v141_v36 }
  0xaa   :  { %v190_v31 = vmul.f32 %v189_v27, %v174_v14 }
  0xab   :  { %v154_v32 = vmul.f32 %v153_v28, %v134_v2  ;;  %v180_v39 = vadd.f32 0.05243302, %v179_v35  ;;  %v143_v45 = vmul.f32 %v142_v40, %v134_v2 }
  0xac   :  { %v191_v33 = vadd.f32 0.112945676, %v190_v31 }
  0xad   :  { %v155_v34 = vadd.f32 1.0, %v154_v32  ;;  %v181_v44 = vmul.f32 %v180_v39, %v174_v14  ;;  %v144_v50 = vadd.f32 1.1283791, %v143_v45 }
  0xae   :  { %v192_v37 = vmul.f32 %v191_v33, %v174_v14 }
  0xaf   :  { %326 = vrcp.f32 %v155_v34  ;;  %v167_v48 = vand.u32 2147483648, %v155_v34  ;;  %v182_v49 = vadd.f32 0.18741608, %v181_v44  ;;  %v165_v52 = vand.u32 2147483647, %v155_v34 }
  0xb0   :  { %v193_v38 = vadd.f32 0.4994258, %v192_v37  ;;  %vm161_vm1 = vweird.f32 %v155_v34  ;;  %v145_v60 = vmul.f32 %v144_v50, %v458_v56 }
  0xb1   :  { %v168_v57 = vor.u32 1.1754944e-38, %v167_v48  ;;  %v183_v58 = vmul.f32 %v182_v49, %v174_v14  ;;  %vm166_vm3 = vcmp.eq.f32.partialorder %v165_v52, 8.507059e+37 }
  0xb2   :  { %v194_v41 = vmul.f32 %v193_v38, %v174_v14 }
  0xb3   :  { %v184_v2 = vadd.f32 1.1283791, %v183_v58 }
  0xb4   :  { %v195_v42 = vadd.f32 1.0, %v194_v41 }
  0xb5   :  { %v327_v43 = vpop.eup %326  ;;  %v185_v56 = vmul.f32 %v184_v2, %v465_v7 }
  0xb6   :  { %v157_v46 = vmul.f32 %v327_v43, %v155_v34  ;;  %328 = vrcp.f32 %v195_v42  ;;  %vm162_vm0 = vweird.f32 %v327_v43  ;;  %v207_v1 = vand.u32 2147483648, %v195_v42 }
  0xb7   :  { %vm163_vm2 = vmor %vm161_vm1, %vm162_vm0  ;;  %v205_v5 = vand.u32 2147483647, %v195_v42  ;;  %vm201_vm5 = vweird.f32 %v195_v42 }
  0xb8   :  { %v158_v47 = vsub.f32 1.0, %v157_v46  ;;  %v208_v11 = vor.u32 1.1754944e-38, %v207_v1 }
  0xb9   :  { %vm206_vm7 = vcmp.eq.f32.partialorder %v205_v5, 8.507059e+37 }
  0xba   :  { %v159_v51 = vmul.f32 %v327_v43, %v158_v47 }
  0xbc   :  { %v329_v54 = vpop.eup %328  ;;  %v160_v55 = vadd.f32 %v327_v43, %v159_v51 }
  0xbd   :  { %v197_v59 = vmul.f32 %v329_v54, %v195_v42  ;;  %vm202_vm4 = vweird.f32 %v329_v54 }
  0xbe   :  { %v164_v61 = vsel %vm163_vm2, %v327_v43, %v160_v55  ;;  %vm203_vm6 = vmor %vm201_vm5, %vm202_vm4 }
  0xbf   :  { %v169_v62 = vsel %vm166_vm3, %v168_v57, %v164_v61  ;;  %v198_v63 = vsub.f32 1.0, %v197_v59 }
  0xc0   :  { %v170_v0 = vmul.f32 %v169_v62, %v145_v60 }
  0xc1   :  { %v199_v4 = vmul.f32 %v329_v54, %v198_v63 }
  0xc2   :  { %v281_v6 = vclamps-f32 %v170_v0, 1.0 }
  0xc3   :  { %v200_v8 = vadd.f32 %v329_v54, %v199_v4 }
  0xc4   :  { %v213_v10 = vadd.f32 1.0, %v281_v6 }
  0xc5   :  { %v204_v12 = vsel %vm203_vm6, %v329_v54, %v200_v8 }
  0xc6   :  { %v215_v13 = vmul.f32 %v213_v10, %v129_v9  ;;  %v209_v14 = vsel %vm206_vm7, %v208_v11, %v204_v12 }
  0xc7   :  { %v210_v15 = vmul.f32 %v209_v14, %v185_v56 }
  0xc8   :  { %253 = vmatmul.f32.vlgmr.msra.gmra.mxu0 %v215_v13 }
  0xc9   :  { %v282_v16 = vclamps-f32 %v210_v15, 1.0 }
  0xcb   :  { %v214_v18 = vadd.f32 1.0, %v282_v16 }
  0xcd   :  { %v216_v19 = vmul.f32 %v214_v18, %v130_v17 }
  0xcf   :  { %256 = vmatmul.f32.vlgmr.msra.gmra.mxu1 %v216_v19 }
 0x145   :  { %v254_v20 = vpop.f32.mrf.mxu0 }
 0x146   :  { %v255_v21 = vadd.f32 %v325_v53, %v254_v20 }
 0x148   :  { %260 = vst [vmem:[#allocation5] sm:$0xff] %v255_v21 }
 0x14c   :  { %v257_v7 = vpop.f32.mrf.mxu1 }
 0x14d   :  { %v258_v22 = vadd.f32 %v325_v53, %v257_v7 }
 0x14f   :  { %261 = vst [vmem:[#allocation5 + $0x8] sm:$0xff] %v258_v22 }
 0x150   :  { %274 = dma.vmem_to_hbm [thread:$0]  %s267_s17, 256, %s269_s20, [#allocation4], %s383_s23, %s383_s23, %s384_s24  }
 0x151   :  { %380 = dma.done.wait [#allocation4], 256  }
 0x152   :  { %381 = vsyncadd [#allocation4], 4294967040 }
 0x153   :  { %279 = vsyncpa [#allocation3], 1 }
 0x154   :  { %280 = vsyncpa [#allocation4], 1 }

</bundles_post_ra>
